<compile_context>
chip_gen: v6e
topology: v6e:2x2x1
jax: 0.10.0
libtpu: 0.0.40
codegen_flags: <defaults>
</compile_context>

<pallas_src>
import jax
import jax.numpy as jnp
from jax.experimental import pallas as pl
from jax.experimental.pallas import tpu as pltpu

LANE = 128  # lane width; all packed slabs are padded to this


def _round_up(n, m):
    return ((n + m - 1) // m) * m


# Row layout of the packed parameter slabs (all 128 lanes wide).
def _enc_layout(d_in):
    return {
        "W0": 0,                    # rows [0, d_in)        : (d_in, hidden) zero-padded to 128 lanes
        "WH": d_in,                 # rows [d_in, d_in+128)  : (hidden, 2L)  zero-padded rows+lanes
        "B0": d_in + LANE,          # 1 row, lanes [0, hidden)
        "BH": d_in + LANE + 1,      # 1 row, lanes [0, 2*latent)
        "ROWS": _round_up(d_in + LANE + 2, 8),
    }


def _dec_layout(latent):
    return {
        "W0": 0,                    # rows [0, latent)          : (latent, hidden) zero-padded lanes
        "W1": latent,               # rows [latent, latent+128)  : (hidden, d_out) zero-padded rows+lanes
        "B0": latent + LANE,        # 1 row, lanes [0, hidden)
        "B1": latent + LANE + 1,    # 1 row, lanes [0, d_out)
        "ROWS": _round_up(latent + LANE + 2, 8),
    }


# -------------------------------------------------------------------------
# Factory: builds the fused kernel + jitted forward for a given configuration
# -------------------------------------------------------------------------
def make_vae_forward(d_in, hidden, latent, d_out):
    # Packing is only valid when everything fits in 128 lanes — fail loudly.
    assert hidden <= LANE, f"hidden={hidden} must be <= {LANE}"
    assert 2 * latent <= LANE, f"2*latent={2*latent} must be <= {LANE}"
    assert d_out <= LANE, f"d_out={d_out} must be <= {LANE}"
    assert 3 * latent + d_out <= LANE, (
        f"output packing 3*latent+d_out={3*latent+d_out} must be <= {LANE}")

    LE = _enc_layout(d_in)
    LD = _dec_layout(latent)
    pad_w = LANE - (3 * latent + d_out)

    def vae_kernel(x_ref, eps_ref, enc_ref, dec_ref, out_ref):
        """Block shapes (full arrays, single grid step):
          x_ref   : (2, B, d_in)     both stream inputs
          eps_ref : (2, B, latent)   both stream noise tensors
          enc_ref : (2, R_E, 128)    per-stream encoder slab
          dec_ref : (R_D, 128)       shared decoder slab
          out_ref : (2B, 128)        [means | log_var | z | recon | pad]
        """
        b = x_ref.shape[1]

        x_s = x_ref[0]            # (B, d_in)
        x_t = x_ref[1]

        # ---- Two independent encoder chains, interleaved -------------------
        h_s = jnp.dot(x_s, enc_ref[0, LE["W0"]:LE["W0"] + d_in, :],
                      preferred_element_type=jnp.float32)
        h_t = jnp.dot(x_t, enc_ref[1, LE["W0"]:LE["W0"] + d_in, :],
                      preferred_element_type=jnp.float32)
        h_s = jnp.maximum(h_s + enc_ref[0, LE["B0"]:LE["B0"] + 1, :], 0.0)
        h_t = jnp.maximum(h_t + enc_ref[1, LE["B0"]:LE["B0"] + 1, :], 0.0)
        # Padded lanes >= hidden are exactly zero (zero weight cols + zero bias),
        # and the head weights have zero rows >= hidden, so no lane slicing needed.
        heads_s = (jnp.dot(h_s, enc_ref[0, LE["WH"]:LE["WH"] + LANE, :],
                           preferred_element_type=jnp.float32)
                   + enc_ref[0, LE["BH"]:LE["BH"] + 1, :])
        heads_t = (jnp.dot(h_t, enc_ref[1, LE["WH"]:LE["WH"] + LANE, :],
                           preferred_element_type=jnp.float32)
                   + enc_ref[1, LE["BH"]:LE["BH"] + 1, :])

        # ---- Reparameterization: z = eps * exp(0.5*log_var) + means --------
        z_s = (eps_ref[0] * jnp.exp(0.5 * heads_s[:, latent:2 * latent])
               + heads_s[:, 0:latent])
        z_t = (eps_ref[1] * jnp.exp(0.5 * heads_t[:, latent:2 * latent])
               + heads_t[:, 0:latent])
        z = jnp.concatenate([z_s, z_t], axis=0)            # (2B, latent)

        # ---- Shared decoder, ONE pass over both streams --------------------
        hd = jnp.dot(z, dec_ref[LD["W0"]:LD["W0"] + latent, :],
                     preferred_element_type=jnp.float32)
        hd = jnp.maximum(hd + dec_ref[LD["B0"]:LD["B0"] + 1, :], 0.0)
        xr = (jnp.dot(hd, dec_ref[LD["W1"]:LD["W1"] + LANE, :],
                      preferred_element_type=jnp.float32)
              + dec_ref[LD["B1"]:LD["B1"] + 1, :])
        # Slice to the real d_out lanes BEFORE sigmoid so padded lanes (which
        # are exactly 0) do not contribute 0.5 each to the L2 norm.
        xr = jax.nn.sigmoid(xr[:, 0:d_out])
        # F.normalize(x, p=2, dim=1) == x / max(||x||, 1e-12); sigmoid output
        # is strictly positive, so rsqrt of the clamped sum of squares matches.
        sumsq = jnp.sum(xr * xr, axis=1, keepdims=True)
        recon = xr * jax.lax.rsqrt(jnp.maximum(sumsq, 1e-24))   # (2B, d_out)

        # ---- Single lane-dense (2B, 128) output slab ------------------------
        heads2 = jnp.concatenate(
            [heads_s[:, 0:2 * latent], heads_t[:, 0:2 * latent]], axis=0)
        pieces = [heads2, z, recon]
        if pad_w > 0:
            pieces.append(jnp.zeros((2 * b, pad_w), jnp.float32))
        out_ref[...] = jnp.concatenate(pieces, axis=1)

    @jax.jit
    def forward(x_S, x_T, enc_slab, dec_slab, eps_S, eps_T):
        B = x_S.shape[0]
        x = jnp.stack([x_S, x_T])          # (2, B, d_in)
        eps = jnp.stack([eps_S, eps_T])    # (2, B, latent)

        out = pl.pallas_call(
            vae_kernel,
            out_shape=jax.ShapeDtypeStruct((2 * B, LANE), jnp.float32),
            grid_spec=pltpu.PrefetchScalarGridSpec(
                num_scalar_prefetch=0,
                grid=(1,),  # single step: whole forward in one invocation
                in_specs=[
                    pl.BlockSpec((2, B, d_in), lambda i: (0, 0, 0)),
                    pl.BlockSpec((2, B, latent), lambda i: (0, 0, 0)),
                    pl.BlockSpec((2, LE["ROWS"], LANE), lambda i: (0, 0, 0)),
                    pl.BlockSpec((LD["ROWS"], LANE), lambda i: (0, 0)),
                ],
                out_specs=pl.BlockSpec((2 * B, LANE), lambda i: (0, 0)),
            ),
            compiler_params=pltpu.CompilerParams(
                dimension_semantics=("arbitrary",)),
        )(x, eps, enc_slab, dec_slab)

        def unpack(r0, r1):
            means = out[r0:r1, 0:latent]
            log_var = out[r0:r1, latent:2 * latent]
            z = out[r0:r1, 2 * latent:3 * latent]
            recon = out[r0:r1, 3 * latent:3 * latent + d_out]
            return means, log_var, z, recon

        means_S, log_var_S, z_S, recon_x_S = unpack(0, B)
        means_T, log_var_T, z_T, recon_x_T = unpack(B, 2 * B)
        return (recon_x_S, recon_x_T, means_S, means_T,
                log_var_S, log_var_T, z_S, z_T)

    return forward


# -------------------------------------------------------------------------
# Deterministic parameter initialization (PyTorch nn.Linear style: U(-k, k),
# k = 1/sqrt(fan_in)); weights stored as (in_features, out_features) and
# packed directly into the lane-padded slabs consumed by the kernel.
# -------------------------------------------------------------------------
def init_linear(key, fan_in, fan_out):
    kw, kb = jax.random.split(key)
    bound = 1.0 / jnp.sqrt(jnp.float32(fan_in))
    w = jax.random.uniform(kw, (fan_in, fan_out), jnp.float32, -bound, bound)
    b = jax.random.uniform(kb, (fan_out,), jnp.float32, -bound, bound)
    return w, b


def init_encoder_slab(key, d_in, hidden, latent):
    k0, k1, k2 = jax.random.split(key, 3)
    w0, b0 = init_linear(k0, d_in, hidden)
    wm, bm = init_linear(k1, hidden, latent)
    wv, bv = init_linear(k2, hidden, latent)
    L = _enc_layout(d_in)
    slab = jnp.zeros((L["ROWS"], LANE), jnp.float32)
    slab = slab.at[L["W0"]:L["W0"] + d_in, 0:hidden].set(w0)
    slab = slab.at[L["WH"]:L["WH"] + hidden, 0:latent].set(wm)
    slab = slab.at[L["WH"]:L["WH"] + hidden, latent:2 * latent].set(wv)
    slab = slab.at[L["B0"], 0:hidden].set(b0)
    slab = slab.at[L["BH"], 0:latent].set(bm)
    slab = slab.at[L["BH"], latent:2 * latent].set(bv)
    return slab


def init_decoder_slab(key, latent, hidden, d_out):
    k0, k1 = jax.random.split(key)
    w0, b0 = init_linear(k0, latent, hidden)
    w1, b1 = init_linear(k1, hidden, d_out)
    L = _dec_layout(latent)
    slab = jnp.zeros((L["ROWS"], LANE), jnp.float32)
    slab = slab.at[L["W0"]:L["W0"] + latent, 0:hidden].set(w0)
    slab = slab.at[L["W1"]:L["W1"] + hidden, 0:d_out].set(w1)
    slab = slab.at[L["B0"], 0:hidden].set(b0)
    slab = slab.at[L["B1"], 0:d_out].set(b1)
    return slab


# -------------------------------------------------------------------------
# Pure-JAX reference (mirrors the PyTorch module) for a correctness check
# -------------------------------------------------------------------------
def vae_reference(x_S, x_T, enc_S_slab, enc_T_slab, dec_slab, eps_S, eps_T,
                  d_in, hidden, latent, d_out):
    LE = _enc_layout(d_in)
    LD = _dec_layout(latent)

    def encode(x, slab):
        w0 = slab[LE["W0"]:LE["W0"] + d_in, 0:hidden]
        b0 = slab[LE["B0"], 0:hidden]
        wh = slab[LE["WH"]:LE["WH"] + hidden, 0:2 * latent]
        bh = slab[LE["BH"], 0:2 * latent]
        h = jnp.maximum(x @ w0 + b0, 0.0)
        heads = h @ wh + bh
        return heads[:, :latent], heads[:, latent:2 * latent]

    def decode(z):
        w0 = dec_slab[LD["W0"]:LD["W0"] + latent, 0:hidden]
        b0 = dec_slab[LD["B0"], 0:hidden]
        w1 = dec_slab[LD["W1"]:LD["W1"] + hidden, 0:d_out]
        b1 = dec_slab[LD["B1"], 0:d_out]
        h = jnp.maximum(z @ w0 + b0, 0.0)
        x = jax.nn.sigmoid(h @ w1 + b1)
        n = jnp.maximum(jnp.sqrt(jnp.sum(x * x, axis=1, keepdims=True)), 1e-12)
        return x / n

    mS, lvS = encode(x_S, enc_S_slab)
    mT, lvT = encode(x_T, enc_T_slab)
    zS = eps_S * jnp.exp(0.5 * lvS) + mS
    zT = eps_T * jnp.exp(0.5 * lvT) + mT
    return (decode(zS), decode(zT), mS, mT, lvS, lvT, zS, zT)


# -------------------------------------------------------------------------
if __name__ == "__main__":
    B = 8            # batch
    D_IN = 32        # encoder_layer_sizes[0]
    HIDDEN = 64      # encoder_layer_sizes[1] / decoder_layer_sizes[0]
    LATENT = 16      # latent_size
    D_OUT = 32       # decoder_layer_sizes[-1]

    root = jax.random.PRNGKey(0)
    k_xS, k_xT, k_encS, k_encT, k_dec, k_epsS, k_epsT = jax.random.split(root, 7)

    x_S = jax.random.normal(k_xS, (B, D_IN), jnp.float32)
    x_T = jax.random.normal(k_xT, (B, D_IN), jnp.float32)

    enc_S_slab = init_encoder_slab(k_encS, D_IN, HIDDEN, LATENT)
    enc_T_slab = init_encoder_slab(k_encT, D_IN, HIDDEN, LATENT)
    dec_slab = init_decoder_slab(k_dec, LATENT, HIDDEN, D_OUT)
    enc_slab = jnp.stack([enc_S_slab, enc_T_slab])   # (2, R_E, 128)

    # torch.randn([batch_size, latent_size]) -> deterministic JAX equivalent.
    # TODO(synk): optionally generate eps in-kernel via pltpu.prng_* (changes
    # the exact random stream vs this reference), so it stays a host input.
    eps_S = jax.random.normal(k_epsS, (B, LATENT), jnp.float32)
    eps_T = jax.random.normal(k_epsT, (B, LATENT), jnp.float32)

    vae_forward = make_vae_forward(D_IN, HIDDEN, LATENT, D_OUT)
    outs = vae_forward(x_S, x_T, enc_slab, dec_slab, eps_S, eps_T)
    outs = jax.block_until_ready(outs)

    # Shape + numerical sanity checks against the pure-JAX reference.
    refs = vae_reference(x_S, x_T, enc_S_slab, enc_T_slab, dec_slab,
                         eps_S, eps_T, D_IN, HIDDEN, LATENT, D_OUT)
    recon_x_S, recon_x_T, means_S, means_T, log_var_S, log_var_T, z_S, z_T = outs
    assert recon_x_S.shape == (B, D_OUT)
    assert recon_x_T.shape == (B, D_OUT)
    assert means_S.shape == (B, LATENT)
    assert log_var_T.shape == (B, LATENT)
    assert z_S.shape == (B, LATENT)
    for got, want in zip(outs, refs):
        assert jnp.allclose(got, want, rtol=1e-5, atol=1e-5), "mismatch vs reference"

    print("KERNEL_OK")
</pallas_src>

<mosaic_0001>
module attributes {stable_mosaic.version = 11 : i64} {
  func.func @vae_kernel(%arg0: i32, %arg1: memref<2x8x32xf32, #tpu.memory_space<vmem>>, %arg2: memref<2x8x16xf32, #tpu.memory_space<vmem>>, %arg3: memref<2x168x128xf32, #tpu.memory_space<vmem>>, %arg4: memref<152x128xf32, #tpu.memory_space<vmem>>, %arg5: memref<16x128xf32, #tpu.memory_space<vmem>>) attributes {dimension_semantics = [#tpu.dimension_semantics<arbitrary>], iteration_bounds = array<i64: 1>, scalar_prefetch = 0 : i64, scratch_operands = 0 : i64, tpu.core_type = #tpu.core_type<tc>, window_params = [{pipeline_mode = #tpu.pipeline_mode<synchronous>, transform_indices = @transform_0, window_bounds = array<i64: 2, 8, 32>}, {pipeline_mode = #tpu.pipeline_mode<synchronous>, transform_indices = @transform_1, window_bounds = array<i64: 2, 8, 16>}, {pipeline_mode = #tpu.pipeline_mode<synchronous>, transform_indices = @transform_2, window_bounds = array<i64: 2, 168, 128>}, {pipeline_mode = #tpu.pipeline_mode<synchronous>, transform_indices = @transform_3, window_bounds = array<i64: 152, 128>}, {pipeline_mode = #tpu.pipeline_mode<synchronous>, transform_indices = @transform_4, window_bounds = array<i64: 16, 128>}]} {
    %c0 = arith.constant 0 : index
    %c0_0 = arith.constant 0 : index
    %c0_1 = arith.constant 0 : index
    %0 = vector.load %arg1[%c0, %c0_0, %c0_1] : memref<2x8x32xf32, #tpu.memory_space<vmem>>, vector<1x8x32xf32>
    %1 = vector.shape_cast %0 : vector<1x8x32xf32> to vector<8x32xf32>
    %c1 = arith.constant 1 : index
    %c0_2 = arith.constant 0 : index
    %c0_3 = arith.constant 0 : index
    %2 = vector.load %arg1[%c1, %c0_2, %c0_3] : memref<2x8x32xf32, #tpu.memory_space<vmem>>, vector<1x8x32xf32>
    %3 = vector.shape_cast %2 : vector<1x8x32xf32> to vector<8x32xf32>
    %c0_4 = arith.constant 0 : index
    %c0_5 = arith.constant 0 : index
    %c0_6 = arith.constant 0 : index
    %4 = vector.load %arg3[%c0_4, %c0_5, %c0_6] : memref<2x168x128xf32, #tpu.memory_space<vmem>>, vector<1x32x128xf32>
    %5 = vector.shape_cast %4 : vector<1x32x128xf32> to vector<32x128xf32>
    %cst = arith.constant dense<0.000000e+00> : vector<8x128xf32>
    %6 = tpu.matmul %1, %5, %cst {dimension_numbers = #tpu.dot_dimension_numbers<[1], [0], [0], [1], [0, 0, 1, 1], [], []>} : vector<8x32xf32>, vector<32x128xf32>, vector<8x128xf32> -> vector<8x128xf32>
    %c1_7 = arith.constant 1 : index
    %c0_8 = arith.constant 0 : index
    %c0_9 = arith.constant 0 : index
    %7 = vector.load %arg3[%c1_7, %c0_8, %c0_9] : memref<2x168x128xf32, #tpu.memory_space<vmem>>, vector<1x32x128xf32>
    %8 = vector.shape_cast %7 : vector<1x32x128xf32> to vector<32x128xf32>
    %cst_10 = arith.constant dense<0.000000e+00> : vector<8x128xf32>
    %9 = tpu.matmul %3, %8, %cst_10 {dimension_numbers = #tpu.dot_dimension_numbers<[1], [0], [0], [1], [0, 0, 1, 1], [], []>} : vector<8x32xf32>, vector<32x128xf32>, vector<8x128xf32> -> vector<8x128xf32>
    %c0_11 = arith.constant 0 : index
    %c160 = arith.constant 160 : index
    %c0_12 = arith.constant 0 : index
    %10 = vector.load %arg3[%c0_11, %c160, %c0_12] : memref<2x168x128xf32, #tpu.memory_space<vmem>>, vector<1x1x128xf32>
    %11 = vector.shape_cast %10 : vector<1x1x128xf32> to vector<1x128xf32>
    %12 = vector.broadcast %11 : vector<1x128xf32> to vector<8x128xf32>
    %13 = arith.addf %6, %12 : vector<8x128xf32>
    %cst_13 = arith.constant 0.000000e+00 : f32
    %14 = vector.broadcast %cst_13 : f32 to vector<8x128xf32>
    %15 = arith.maximumf %13, %14 : vector<8x128xf32>
    %c1_14 = arith.constant 1 : index
    %c160_15 = arith.constant 160 : index
    %c0_16 = arith.constant 0 : index
    %16 = vector.load %arg3[%c1_14, %c160_15, %c0_16] : memref<2x168x128xf32, #tpu.memory_space<vmem>>, vector<1x1x128xf32>
    %17 = vector.shape_cast %16 : vector<1x1x128xf32> to vector<1x128xf32>
    %18 = vector.broadcast %17 : vector<1x128xf32> to vector<8x128xf32>
    %19 = arith.addf %9, %18 : vector<8x128xf32>
    %cst_17 = arith.constant 0.000000e+00 : f32
    %20 = vector.broadcast %cst_17 : f32 to vector<8x128xf32>
    %21 = arith.maximumf %19, %20 : vector<8x128xf32>
    %c0_18 = arith.constant 0 : index
    %c32 = arith.constant 32 : index
    %c0_19 = arith.constant 0 : index
    %22 = vector.load %arg3[%c0_18, %c32, %c0_19] : memref<2x168x128xf32, #tpu.memory_space<vmem>>, vector<1x128x128xf32>
    %23 = vector.shape_cast %22 : vector<1x128x128xf32> to vector<128x128xf32>
    %cst_20 = arith.constant dense<0.000000e+00> : vector<8x128xf32>
    %24 = tpu.matmul %15, %23, %cst_20 {dimension_numbers = #tpu.dot_dimension_numbers<[1], [0], [0], [1], [0, 0, 1, 1], [], []>} : vector<8x128xf32>, vector<128x128xf32>, vector<8x128xf32> -> vector<8x128xf32>
    %c0_21 = arith.constant 0 : index
    %c161 = arith.constant 161 : index
    %c0_22 = arith.constant 0 : index
    %25 = vector.load %arg3[%c0_21, %c161, %c0_22] : memref<2x168x128xf32, #tpu.memory_space<vmem>>, vector<1x1x128xf32>
    %26 = vector.shape_cast %25 : vector<1x1x128xf32> to vector<1x128xf32>
    %27 = vector.broadcast %26 : vector<1x128xf32> to vector<8x128xf32>
    %28 = arith.addf %24, %27 : vector<8x128xf32>
    %c1_23 = arith.constant 1 : index
    %c32_24 = arith.constant 32 : index
    %c0_25 = arith.constant 0 : index
    %29 = vector.load %arg3[%c1_23, %c32_24, %c0_25] : memref<2x168x128xf32, #tpu.memory_space<vmem>>, vector<1x128x128xf32>
    %30 = vector.shape_cast %29 : vector<1x128x128xf32> to vector<128x128xf32>
    %cst_26 = arith.constant dense<0.000000e+00> : vector<8x128xf32>
    %31 = tpu.matmul %21, %30, %cst_26 {dimension_numbers = #tpu.dot_dimension_numbers<[1], [0], [0], [1], [0, 0, 1, 1], [], []>} : vector<8x128xf32>, vector<128x128xf32>, vector<8x128xf32> -> vector<8x128xf32>
    %c1_27 = arith.constant 1 : index
    %c161_28 = arith.constant 161 : index
    %c0_29 = arith.constant 0 : index
    %32 = vector.load %arg3[%c1_27, %c161_28, %c0_29] : memref<2x168x128xf32, #tpu.memory_space<vmem>>, vector<1x1x128xf32>
    %33 = vector.shape_cast %32 : vector<1x1x128xf32> to vector<1x128xf32>
    %34 = vector.broadcast %33 : vector<1x128xf32> to vector<8x128xf32>
    %35 = arith.addf %31, %34 : vector<8x128xf32>
    %c0_30 = arith.constant 0 : index
    %c0_31 = arith.constant 0 : index
    %c0_32 = arith.constant 0 : index
    %36 = vector.load %arg2[%c0_30, %c0_31, %c0_32] : memref<2x8x16xf32, #tpu.memory_space<vmem>>, vector<1x8x16xf32>
    %37 = vector.shape_cast %36 : vector<1x8x16xf32> to vector<8x16xf32>
    %38 = vector.extract_strided_slice %28 {offsets = [0, 16], sizes = [8, 16], strides = [1, 1]} : vector<8x128xf32> to vector<8x16xf32>
    %cst_33 = arith.constant 5.000000e-01 : f32
    %39 = vector.broadcast %cst_33 : f32 to vector<8x16xf32>
    %40 = arith.mulf %39, %38 : vector<8x16xf32>
    %41 = math.exp %40 : vector<8x16xf32>
    %42 = arith.mulf %37, %41 : vector<8x16xf32>
    %43 = vector.extract_strided_slice %28 {offsets = [0, 0], sizes = [8, 16], strides = [1, 1]} : vector<8x128xf32> to vector<8x16xf32>
    %44 = arith.addf %42, %43 : vector<8x16xf32>
    %c1_34 = arith.constant 1 : index
    %c0_35 = arith.constant 0 : index
    %c0_36 = arith.constant 0 : index
    %45 = vector.load %arg2[%c1_34, %c0_35, %c0_36] : memref<2x8x16xf32, #tpu.memory_space<vmem>>, vector<1x8x16xf32>
    %46 = vector.shape_cast %45 : vector<1x8x16xf32> to vector<8x16xf32>
    %47 = vector.extract_strided_slice %35 {offsets = [0, 16], sizes = [8, 16], strides = [1, 1]} : vector<8x128xf32> to vector<8x16xf32>
    %cst_37 = arith.constant 5.000000e-01 : f32
    %48 = vector.broadcast %cst_37 : f32 to vector<8x16xf32>
    %49 = arith.mulf %48, %47 : vector<8x16xf32>
    %50 = math.exp %49 : vector<8x16xf32>
    %51 = arith.mulf %46, %50 : vector<8x16xf32>
    %52 = vector.extract_strided_slice %35 {offsets = [0, 0], sizes = [8, 16], strides = [1, 1]} : vector<8x128xf32> to vector<8x16xf32>
    %53 = arith.addf %51, %52 : vector<8x16xf32>
    %54 = tpu.concatenate %44, %53 in 0 : vector<8x16xf32>, vector<8x16xf32> -> vector<16x16xf32>
    %c0_38 = arith.constant 0 : index
    %c0_39 = arith.constant 0 : index
    %55 = vector.load %arg4[%c0_38, %c0_39] : memref<152x128xf32, #tpu.memory_space<vmem>>, vector<16x128xf32>
    %cst_40 = arith.constant dense<0.000000e+00> : vector<16x128xf32>
    %56 = tpu.matmul %54, %55, %cst_40 {dimension_numbers = #tpu.dot_dimension_numbers<[1], [0], [0], [1], [0, 0, 1, 1], [], []>} : vector<16x16xf32>, vector<16x128xf32>, vector<16x128xf32> -> vector<16x128xf32>
    %c144 = arith.constant 144 : index
    %c0_41 = arith.constant 0 : index
    %57 = vector.load %arg4[%c144, %c0_41] : memref<152x128xf32, #tpu.memory_space<vmem>>, vector<1x128xf32>
    %58 = vector.broadcast %57 : vector<1x128xf32> to vector<16x128xf32>
    %59 = arith.addf %56, %58 : vector<16x128xf32>
    %cst_42 = arith.constant 0.000000e+00 : f32
    %60 = vector.broadcast %cst_42 : f32 to vector<16x128xf32>
    %61 = arith.maximumf %59, %60 : vector<16x128xf32>
    %c16 = arith.constant 16 : index
    %c0_43 = arith.constant 0 : index
    %62 = vector.load %arg4[%c16, %c0_43] : memref<152x128xf32, #tpu.memory_space<vmem>>, vector<128x128xf32>
    %cst_44 = arith.constant dense<0.000000e+00> : vector<16x128xf32>
    %63 = tpu.matmul %61, %62, %cst_44 {dimension_numbers = #tpu.dot_dimension_numbers<[1], [0], [0], [1], [0, 0, 1, 1], [], []>} : vector<16x128xf32>, vector<128x128xf32>, vector<16x128xf32> -> vector<16x128xf32>
    %c145 = arith.constant 145 : index
    %c0_45 = arith.constant 0 : index
    %64 = vector.load %arg4[%c145, %c0_45] : memref<152x128xf32, #tpu.memory_space<vmem>>, vector<1x128xf32>
    %65 = vector.broadcast %64 : vector<1x128xf32> to vector<16x128xf32>
    %66 = arith.addf %63, %65 : vector<16x128xf32>
    %67 = vector.extract_strided_slice %66 {offsets = [0, 0], sizes = [16, 32], strides = [1, 1]} : vector<16x128xf32> to vector<16x32xf32>
    %68 = arith.negf %67 : vector<16x32xf32>
    %69 = math.exp %68 : vector<16x32xf32>
    %cst_46 = arith.constant 1.000000e+00 : f32
    %70 = vector.broadcast %cst_46 : f32 to vector<16x32xf32>
    %71 = arith.addf %70, %69 : vector<16x32xf32>
    %72 = arith.divf %70, %71 : vector<16x32xf32>
    %73 = arith.mulf %72, %72 : vector<16x32xf32>
    %cst_47 = arith.constant dense<0.000000e+00> : vector<16xf32>
    %74 = vector.multi_reduction <add>, %73, %cst_47 [1] : vector<16x32xf32> to vector<16xf32>
    %75 = vector.shape_cast %74 : vector<16xf32> to vector<16x1xf32>
    %cst_48 = arith.constant 1.000000e-24 : f32
    %76 = vector.broadcast %cst_48 : f32 to vector<16x1xf32>
    %77 = arith.maximumf %75, %76 : vector<16x1xf32>
    %78 = math.rsqrt %77 : vector<16x1xf32>
    %79 = vector.broadcast %78 : vector<16x1xf32> to vector<16x32xf32>
    %80 = arith.mulf %72, %79 : vector<16x32xf32>
    %81 = vector.extract_strided_slice %28 {offsets = [0, 0], sizes = [8, 32], strides = [1, 1]} : vector<8x128xf32> to vector<8x32xf32>
    %82 = vector.extract_strided_slice %35 {offsets = [0, 0], sizes = [8, 32], strides = [1, 1]} : vector<8x128xf32> to vector<8x32xf32>
    %83 = tpu.concatenate %81, %82 in 0 : vector<8x32xf32>, vector<8x32xf32> -> vector<16x32xf32>
    %cst_49 = arith.constant 0.000000e+00 : f32
    %84 = vector.broadcast %cst_49 : f32 to vector<16x48xf32>
    %85 = tpu.concatenate %83, %54, %80, %84 in 1 : vector<16x32xf32>, vector<16x16xf32>, vector<16x32xf32>, vector<16x48xf32> -> vector<16x128xf32>
    %c0_50 = arith.constant 0 : index
    %c0_51 = arith.constant 0 : index
    %86 = vector.load %arg5[%c0_50, %c0_51] : memref<16x128xf32, #tpu.memory_space<vmem>>, vector<16x128xf32>
    tpu.vector_store %arg5[%c0_50, %c0_51], %85 {strides = array<i32>} : memref<16x128xf32, #tpu.memory_space<vmem>>, vector<16x128xf32>,
    return
  }
  func.func @transform_0(%arg0: i32) -> (i32, i32, i32) {
    %c0_i32 = arith.constant 0 : i32
    %c0_i32_0 = arith.constant 0 : i32
    %c0_i32_1 = arith.constant 0 : i32
    %c0_i32_2 = arith.constant 0 : i32
    return %c0_i32, %c0_i32_0, %c0_i32_1 : i32, i32, i32
  }
  func.func @transform_1(%arg0: i32) -> (i32, i32, i32) {
    %c0_i32 = arith.constant 0 : i32
    %c0_i32_0 = arith.constant 0 : i32
    %c0_i32_1 = arith.constant 0 : i32
    %c0_i32_2 = arith.constant 0 : i32
    return %c0_i32, %c0_i32_0, %c0_i32_1 : i32, i32, i32
  }
  func.func @transform_2(%arg0: i32) -> (i32, i32, i32) {
    %c0_i32 = arith.constant 0 : i32
    %c0_i32_0 = arith.constant 0 : i32
    %c0_i32_1 = arith.constant 0 : i32
    %c0_i32_2 = arith.constant 0 : i32
    return %c0_i32, %c0_i32_0, %c0_i32_1 : i32, i32, i32
  }
  func.func @transform_3(%arg0: i32) -> (i32, i32) {
    %c0_i32 = arith.constant 0 : i32
    %c0_i32_0 = arith.constant 0 : i32
    %c0_i32_1 = arith.constant 0 : i32
    return %c0_i32, %c0_i32_0 : i32, i32
  }
  func.func @transform_4(%arg0: i32) -> (i32, i32) {
    %c0_i32 = arith.constant 0 : i32
    %c0_i32_0 = arith.constant 0 : i32
    %c0_i32_1 = arith.constant 0 : i32
    return %c0_i32, %c0_i32_0 : i32, i32
  }
}

</mosaic_0001>

<bundles_post_ra>
// kernel: forward.1
= control target key start
LH: loop header
LB: loop body
LE: loop exit
PB: predicated region body
PF: predicated region fallthrough
CT: control target
= control target key end

     0   :  { %9 = vsyncpa [#allocation3], 0  ;;  %s1071_s0 = inlined_call_operand.vmem [shape: f32[2,8,32], index: 0, kind: input, shape index: {}]   ;;  %s1072_s1 = inlined_call_operand.vmem [shape: f32[2,8,16], index: 1, kind: input, shape index: {}]   ;;  %s1073_s2 = inlined_call_operand.hbm [shape: f32[2,168,128], index: 2, kind: input, shape index: {}]   ;;  %s1074_s3 = inlined_call_operand.hbm [shape: f32[152,128], index: 3, kind: input, shape index: {}]   ;;  %s1075_s4 = inlined_call_operand.vmem [shape: f32[16,128], index: 4, kind: output, shape index: {}]  }
   0x1   :  { %10 = vsyncpa [#allocation5], 0  ;;  %s945_s15 = smov [#allocation2]  }
   0x2   :  { %s20_s16 = sshll.u32 %s945_s15, 4  ;;  %s21_s16 = int_to_ptr.vmem [resolvable:$true] %s20_s16 }
   0x3   :  { %s909_s17 = scalar_lea.vmem %s21_s16, 5376  ;;  %p914_p1 = scmp.lt.s32.totalorder %s21_s16, %s21_s16 }
   0x4   :  { %p910_p0 = scmp.ne.s32.totalorder %s21_s16, %s909_s17  ;;  %p915_p2 = scmp.lt.s32.totalorder %s909_s17, %s909_s17 }
   0x6   :  { %p916_p3 = por %p915_p2, %p914_p1 }
   0x8   :  { %p917_p4 = pnand %p916_p3, %p910_p0 }
   0xa   :  { %920 = shalt.err (!%p917_p4)
}
   0xb   :  { %s946_s18 = smov 128   ;;  %s947_s19 = smov 8  }
   0xc   :  { %26 = dma.hbm_to_vmem [thread:$0]  %s1073_s2, 5376, %s21_s16, [#allocation3], %s946_s18, %s946_s18, %s947_s19  }
   0xd   :  { %s948_s22 = smov [#allocation4]  }
   0xe   :  { %s32_s23 = sshll.u32 %s948_s22, 4  ;;  %s33_s23 = int_to_ptr.vmem [resolvable:$true] %s32_s23 }
   0xf   :  { %s929_s24 = scalar_lea.vmem %s33_s23, 2432  ;;  %p934_p6 = scmp.lt.s32.totalorder %s33_s23, %s33_s23 }
  0x10   :  { %p930_p5 = scmp.ne.s32.totalorder %s33_s23, %s929_s24  ;;  %p935_p7 = scmp.lt.s32.totalorder %s929_s24, %s929_s24 }
  0x12   :  { %p936_p8 = por %p935_p7, %p934_p6 }
  0x14   :  { %p937_p9 = pnand %p936_p8, %p930_p5 }
  0x16   :  { %940 = shalt.err (!%p937_p9)
}
  0x17   :  { %38 = dma.hbm_to_vmem [thread:$0]  %s1074_s3, 2432, %s33_s23, [#allocation5], %s946_s18, %s946_s18, %s947_s19  }
  0x18   :  { %941 = dma.done.wait [#allocation3], 5376  }
  0x19   :  { %942 = vsyncadd [#allocation3], 4294961920 }
  0x1a   :  { %943 = dma.done.wait [#allocation5], 2432  }
  0x1b   :  { %944 = vsyncadd [#allocation5], 4294964864  ;;  %v949_v0 = vmov 0.0   ;;  %vm950_vm0 = vmmov 0   ;;  %v51_v1 = vld [vmem:[#allocation2 + $0x18] sm:$0xff]  ;;  %v50_v2 = vld [vmem:[#allocation2 + $0x10] sm:$0xff] }
  0x1c   :  { %742 = vmatprep.subr.mxu0 %v949_v0  ;;  %750 = vmatprep.mubr.msk.f32.mxu0 %vm950_vm0, %v949_v0  ;;  %v49_v3 = vld [vmem:[#allocation2 + $0x8] sm:$0xff]  ;;  %v48_v4 = vld [vmem:[#allocation2] sm:$0xff]  ;;  %vm62_vm1 = vcmask 261120   ;;  %v321_v8 = vld [vmem:[#allocation2 + $0x138] sm:$0xff]  ;;  %vm426_vm2 = vcmask 130048   ;;  %s952_s5 = smov 32  }
  0x1d   :  { %799 = vmatprep.subr.mxu1 %v949_v0  ;;  %831 = vmatprep.mubr.msk.f32.mxu1 %vm950_vm0, %v949_v0  ;;  %v45_v5 = vld [vmem:[%s1071_s0] sm:$0xff]  ;;  %v55_v9 = vld [vmem:[#allocation2 + $0xb8] sm:$0xff]  ;;  %v320_v10 = vld [vmem:[#allocation2 + $0x130] sm:$0xff]  ;;  %vm648_vm3 = vcmask 392192   ;;  %vm651_vm4 = vcmask 654336  }
  0x1e   :  { %743 = vmatpush3.msra.mxu0 %v51_v1  ;;  %v322_v6 = vld [vmem:[#allocation2 + $0x140] sm:$0xff]  ;;  %v54_v11 = vld [vmem:[#allocation2 + $0xb0] sm:$0xff]  ;;  %v319_v12 = vld [vmem:[#allocation2 + $0x128] sm:$0xff] }
  0x1f   :  { %744 = vmatprep.subr.mxu0 %v949_v0  ;;  %v56_v7 = vld [vmem:[#allocation2 + $0xc0] sm:$0xff]  ;;  %800 = vmatpush3.msra.mxu1 %v322_v6  ;;  %v53_v13 = vld [vmem:[#allocation2 + $0xa8] sm:$0xff]  ;;  %v231_v15 = vld [vmem:[#allocation2 + $0x98] sm:$0xff] }
  0x20   :  { %745 = vmatpush3.msra.mxu0 %v50_v2  ;;  %801 = vmatprep.subr.mxu1 %v949_v0  ;;  %v662_v14 = vld [vmem:[%s1071_s0 + $0x8] sm:$0xff]  ;;  %v318_v16 = vld [vmem:[#allocation2 + $0x120] sm:$0xff]  ;;  %v230_v17 = vld [vmem:[#allocation2 + $0x90] sm:$0xff]  ;;  %s951_s0 = smov 112  }
  0x21   :  { %746 = vmatprep.subr.mxu0 %v949_v0  ;;  %802 = vmatpush3.msra.mxu1 %v321_v8  ;;  %v317_v18 = vld [vmem:[#allocation2 + $0x118] sm:$0xff]  ;;  %v229_v19 = vld [vmem:[#allocation2 + $0x88] sm:$0xff]  ;;  %v316_v20 = vld [vmem:[#allocation2 + $0x110] sm:$0xff] }
  0x22   :  { %747 = vmatpush3.msra.mxu0 %v49_v3  ;;  %803 = vmatprep.subr.mxu1 %v949_v0  ;;  %v228_v21 = vld [vmem:[#allocation2 + $0x80] sm:$0xff]  ;;  %v315_v22 = vld [vmem:[#allocation2 + $0x108] sm:$0xff]  ;;  %v227_v23 = vld [vmem:[#allocation2 + $0x78] sm:$0xff] }
  0x23   :  { %748 = vmatprep.subr.mxu0 %v949_v0  ;;  %804 = vmatpush3.msra.mxu1 %v320_v10  ;;  %v314_v24 = vld [vmem:[#allocation2 + $0x100] sm:$0xff]  ;;  %v226_v25 = vld [vmem:[#allocation2 + $0x70] sm:$0xff]  ;;  %v225_v26 = vld [vmem:[#allocation2 + $0x68] sm:$0xff] }
  0x24   :  { %749 = vmatpush3.msra.mxu0 %v48_v4  ;;  %805 = vmatprep.subr.mxu1 %v949_v0  ;;  %v224_v27 = vld [vmem:[#allocation2 + $0x60] sm:$0xff]  ;;  %v223_v28 = vld [vmem:[#allocation2 + $0x58] sm:$0xff]  ;;  %v222_v29 = vld [vmem:[#allocation2 + $0x50] sm:$0xff] }
  0x25   :  { %751 = vmatmul.mubr.msk.f32.vlgmr.msra.gmra.mxu0 %vm62_vm1, %v45_v5  ;;  %753 = vmatprep.subr.mxu0 %v949_v0  ;;  %v221_v30 = vld [vmem:[#allocation2 + $0x48] sm:$0xff]  ;;  %v220_v31 = vld [vmem:[#allocation2 + $0x40] sm:$0xff]  ;;  %v219_v32 = vld [vmem:[#allocation2 + $0x38] sm:$0xff] }
  0x26   :  { %754 = vmatpush3.msra.mxu0 %v56_v7  ;;  %761 = vmatprep.mubr.msk.f32.mxu0 %vm950_vm0, %v949_v0  ;;  %v218_v33 = vld [vmem:[#allocation2 + $0x30] sm:$0xff]  ;;  %v313_v34 = vld [vmem:[#allocation2 + $0xf8] sm:$0xff]  ;;  %v217_v35 = vld [vmem:[#allocation2 + $0x28] sm:$0xff] }
  0x27   :  { %755 = vmatprep.subr.mxu0 %v949_v0  ;;  %806 = vmatpush3.msra.mxu1 %v319_v12  ;;  %v312_v36 = vld [vmem:[#allocation2 + $0xf0] sm:$0xff]  ;;  %v216_v37 = vld [vmem:[#allocation2 + $0x20] sm:$0xff]  ;;  %v311_v38 = vld [vmem:[#allocation2 + $0xe8] sm:$0xff] }
  0x28   :  { %756 = vmatpush3.msra.mxu0 %v55_v9  ;;  %807 = vmatprep.subr.mxu1 %v949_v0  ;;  %v310_v39 = vld [vmem:[#allocation2 + $0xe0] sm:$0xff]  ;;  %v309_v40 = vld [vmem:[#allocation2 + $0xd8] sm:$0xff]  ;;  %v308_v41 = vld [vmem:[#allocation2 + $0xd0] sm:$0xff] }
  0x29   :  { %757 = vmatprep.subr.mxu0 %v949_v0  ;;  %808 = vmatpush3.msra.mxu1 %v318_v16  ;;  %v307_v42 = vld [vmem:[#allocation2 + $0xc8] sm:$0xff]  ;;  %v663_v43 = vld [vmem:[#allocation2 + $0xa0] ss:$0 sm:$0xff]  ;;  %v667_v53 = vld [vmem:[#allocation2 + $0xa1] ss:$0 sm:$0xff] }
  0x2a   :  { %758 = vmatpush3.msra.mxu0 %v54_v11  ;;  %809 = vmatprep.subr.mxu1 %v949_v0  ;;  %v665_v48 = vld [vmem:[#allocation2 + $0x148] ss:$0 sm:$0xff]  ;;  %v668_v59 = vld [vmem:[#allocation2 + $0x149] ss:$0 sm:$0xff]  ;;  %v419_v2 = vld [vmem:[#allocation4] sm:$0xff] }
  0x2b   :  { %759 = vmatprep.subr.mxu0 %v949_v0  ;;  %810 = vmatpush3.msra.mxu1 %v317_v18  ;;  %v525_v5 = vld [vmem:[#allocation4 + $0x88] sm:$0xff]  ;;  %v524_v6 = vld [vmem:[#allocation4 + $0x80] sm:$0xff]  ;;  %v523_v7 = vld [vmem:[#allocation4 + $0x78] sm:$0xff] }
  0x2c   :  { %760 = vmatpush3.msra.mxu0 %v53_v13  ;;  %811 = vmatprep.subr.mxu1 %v949_v0  ;;  %v522_v8 = vld [vmem:[#allocation4 + $0x70] sm:$0xff]  ;;  %v521_v10 = vld [vmem:[#allocation4 + $0x68] sm:$0xff]  ;;  %v520_v12 = vld [vmem:[#allocation4 + $0x60] sm:$0xff] }
  0x2d   :  { %762 = vmatmul.mubr.msk.f32.vlgmr.msra.gmra.mxu0 %vm62_vm1, %v662_v14  ;;  %764 = vmatprep.subr.mxu0 %v949_v0  ;;  %v398_v9 = vld [vmem:[%s1072_s1] sm:$0xff]  ;;  %v517_v18 = vld [vmem:[#allocation4 + $0x48] sm:$0xff] }
  0x2e   :  { %765 = vmatpush3.msra.mxu0 %v231_v15  ;;  %812 = vmatpush3.msra.mxu1 %v316_v20  ;;  %v519_v15 = vld [vmem:[#allocation4 + $0x58] sm:$0xff]  ;;  %v518_v16 = vld [vmem:[#allocation4 + $0x50] sm:$0xff] }
  0x2f   :  { %766 = vmatprep.subr.mxu0 %v949_v0  ;;  %813 = vmatprep.subr.mxu1 %v949_v0 }
  0x30   :  { %767 = vmatpush3.msra.mxu0 %v230_v17  ;;  %814 = vmatpush3.msra.mxu1 %v315_v22  ;;  %v669_v17 = vld [vmem:[%s1072_s1 + $0x8] sm:$0xff]  ;;  %s953_s1 = smov 48  }
  0x31   :  { %768 = vmatprep.subr.mxu0 %v949_v0  ;;  %815 = vmatprep.subr.mxu1 %v949_v0 }
  0x32   :  { %769 = vmatpush3.msra.mxu0 %v229_v19  ;;  %816 = vmatpush3.msra.mxu1 %v314_v24  ;;  %v514_v24 = vld [vmem:[#allocation4 + $0x30] sm:$0xff] }
  0x33   :  { %770 = vmatprep.subr.mxu0 %v949_v0  ;;  %817 = vmatprep.subr.mxu1 %v949_v0 }
  0x34   :  { %771 = vmatpush3.msra.mxu0 %v228_v21  ;;  %796 = vmatprep.mubr.msk.f32.mxu0 %vm950_vm0, %v949_v0  ;;  %v516_v21 = vld [vmem:[#allocation4 + $0x40] sm:$0xff] }
  0x35   :  { %772 = vmatprep.subr.mxu0 %v949_v0  ;;  %818 = vmatpush3.msra.mxu1 %v313_v34 }
  0x36   :  { %773 = vmatpush3.msra.mxu0 %v227_v23  ;;  %819 = vmatprep.subr.mxu1 %v949_v0  ;;  %v515_v23 = vld [vmem:[#allocation4 + $0x38] sm:$0xff] }
  0x37   :  { %774 = vmatprep.subr.mxu0 %v949_v0  ;;  %820 = vmatpush3.msra.mxu1 %v312_v36  ;;  %v673_v36 = vld [vmem:[#allocation4 + $0x91] ss:$0 sm:$0xff] }
  0x38   :  { %775 = vmatpush3.msra.mxu0 %v226_v25  ;;  %821 = vmatprep.subr.mxu1 %v949_v0  ;;  %v513_v25 = vld [vmem:[#allocation4 + $0x28] sm:$0xff] }
  0x39   :  { %776 = vmatprep.subr.mxu0 %v949_v0  ;;  %822 = vmatpush3.msra.mxu1 %v311_v38 }
  0x3a   :  { %777 = vmatpush3.msra.mxu0 %v225_v26  ;;  %823 = vmatprep.subr.mxu1 %v949_v0  ;;  %v512_v26 = vld [vmem:[#allocation4 + $0x20] sm:$0xff] }
  0x3b   :  { %778 = vmatprep.subr.mxu0 %v949_v0  ;;  %824 = vmatpush3.msra.mxu1 %v310_v39 }
  0x3c   :  { %779 = vmatpush3.msra.mxu0 %v224_v27  ;;  %825 = vmatprep.subr.mxu1 %v949_v0  ;;  %v511_v27 = vld [vmem:[#allocation4 + $0x18] sm:$0xff] }
  0x3d   :  { %780 = vmatprep.subr.mxu0 %v949_v0  ;;  %826 = vmatpush3.msra.mxu1 %v309_v40 }
  0x3e   :  { %781 = vmatpush3.msra.mxu0 %v223_v28  ;;  %827 = vmatprep.subr.mxu1 %v949_v0  ;;  %v510_v28 = vld [vmem:[#allocation4 + $0x10] sm:$0xff] }
  0x3f   :  { %782 = vmatprep.subr.mxu0 %v949_v0  ;;  %828 = vmatpush3.msra.mxu1 %v308_v41 }
  0x40   :  { %783 = vmatpush3.msra.mxu0 %v222_v29  ;;  %829 = vmatprep.subr.mxu1 %v949_v0  ;;  %v670_v29 = vld [vmem:[#allocation4 + $0x90] ss:$0 sm:$0xff] }
  0x41   :  { %784 = vmatprep.subr.mxu0 %v949_v0  ;;  %830 = vmatpush3.msra.mxu1 %v307_v42 }
  0x42   :  { %785 = vmatpush3.msra.mxu0 %v221_v30  ;;  %841 = vmatprep.subr.mxu1 %v525_v5 }
  0x43   :  { %786 = vmatprep.subr.mxu0 %v949_v0 }
  0x44   :  { %787 = vmatpush3.msra.mxu0 %v220_v31 }
  0x45   :  { %788 = vmatprep.subr.mxu0 %v949_v0 }
  0x46   :  { %789 = vmatpush3.msra.mxu0 %v219_v32 }
  0x47   :  { %790 = vmatprep.subr.mxu0 %v949_v0 }
  0x48   :  { %791 = vmatpush3.msra.mxu0 %v218_v33 }
  0x49   :  { %792 = vmatprep.subr.mxu0 %v949_v0 }
  0x4a   :  { %793 = vmatpush3.msra.mxu0 %v217_v35 }
  0x4b   :  { %794 = vmatprep.subr.mxu0 %v949_v0  ;;  %v420_v0 = vld [vmem:[#allocation4 + $0x8] sm:$0xff] }
  0x4c   :  { %795 = vmatpush3.msra.mxu0 %v216_v37 }
  0x4d   :  { %834 = vmatprep.subr.mxu0 %v420_v0 }
  0xe5   :  { %v132_v44 = vpop.f32.mrf.mxu0 }
  0xe6   :  { %v133_v45 = vadd.f32 %v663_v43, %v132_v44 }
  0xe7   :  { %v752_v46 = vpop.f32.mrf.mxu0 }
  0xe8   :  { %v136_v47 = vmax.f32 %v133_v45, 0.0 }
  0xea   :  { %797 = vmatmul.mubr.f32.vlgmr.msra.gmra.mxu0 %v136_v47 }
  0xeb   :  { %835 = vmatpush3.msra.mxu0 %v420_v0 }
  0xec   :  { %836 = vmatprep.subr.mxu0 %v419_v2 }
  0xed   :  { %v211_v49 = vpop.f32.mrf.mxu0  ;;  %837 = vmatpush3.msra.mxu0 %v419_v2 }
  0xee   :  { %v212_v50 = vadd.f32 %v665_v48, %v211_v49 }
  0xef   :  { %v763_v51 = vpop.f32.mrf.mxu0 }
  0xf0   :  { %v215_v52 = vmax.f32 %v212_v50, 0.0 }
  0xf2   :  { %832 = vmatmul.mubr.f32.vlgmr.msra.gmra.mxu1 %v215_v52 }
  0xf3   :  { %842 = vmatpush3.msra.mxu1 %v525_v5 }
  0xf4   :  { %843 = vmatprep.subr.mxu1 %v524_v6 }
  0xf5   :  { %844 = vmatpush3.msra.mxu1 %v524_v6 }
  0xf6   :  { %845 = vmatprep.subr.mxu1 %v523_v7 }
  0xf7   :  { %846 = vmatpush3.msra.mxu1 %v523_v7 }
  0xf8   :  { %847 = vmatprep.subr.mxu1 %v522_v8 }
  0xf9   :  { %848 = vmatpush3.msra.mxu1 %v522_v8 }
  0xfa   :  { %849 = vmatprep.subr.mxu1 %v521_v10 }
  0xfb   :  { %850 = vmatpush3.msra.mxu1 %v521_v10 }
  0xfc   :  { %851 = vmatprep.subr.mxu1 %v520_v12 }
  0xfd   :  { %852 = vmatpush3.msra.mxu1 %v520_v12 }
  0xfe   :  { %853 = vmatprep.subr.mxu1 %v519_v15 }
  0xff   :  { %854 = vmatpush3.msra.mxu1 %v519_v15 }
 0x100   :  { %855 = vmatprep.subr.mxu1 %v518_v16 }
 0x101   :  { %856 = vmatpush3.msra.mxu1 %v518_v16 }
 0x102   :  { %857 = vmatprep.subr.mxu1 %v517_v18 }
 0x103   :  { %858 = vmatpush3.msra.mxu1 %v517_v18 }
 0x104   :  { %859 = vmatprep.subr.mxu1 %v516_v21 }
 0x105   :  { %860 = vmatpush3.msra.mxu1 %v516_v21 }
 0x106   :  { %861 = vmatprep.subr.mxu1 %v515_v23 }
 0x107   :  { %862 = vmatpush3.msra.mxu1 %v515_v23 }
 0x108   :  { %863 = vmatprep.subr.mxu1 %v514_v24 }
 0x109   :  { %864 = vmatpush3.msra.mxu1 %v514_v24 }
 0x10a   :  { %865 = vmatprep.subr.mxu1 %v513_v25 }
 0x10b   :  { %866 = vmatpush3.msra.mxu1 %v513_v25 }
 0x10c   :  { %867 = vmatprep.subr.mxu1 %v512_v26 }
 0x10d   :  { %868 = vmatpush3.msra.mxu1 %v512_v26 }
 0x10e   :  { %869 = vmatprep.subr.mxu1 %v511_v27 }
 0x10f   :  { %870 = vmatpush3.msra.mxu1 %v511_v27 }
 0x110   :  { %871 = vmatprep.subr.mxu1 %v510_v28 }
 0x111   :  { %872 = vmatpush3.msra.mxu1 %v510_v28 }
 0x1aa   :  { %v303_v54 = vpop.f32.mrf.mxu0 }
 0x1ab   :  { %v1041_v55 = vadd.f32 %v667_v53, %v303_v54 }
 0x1ac   :  { %v798_v56 = vpop.f32.mrf.mxu0 }
 0x1ad   :  { %v399_v57 = vmul.f32 0.5, %v1041_v55 }
 0x1af   :  { %v400_v58 = vmul.f32 1.442695, %v399_v57 }
 0x1b1   :  { %885 = vpow2.f32 %v400_v58 }
 0x1b2   :  { %v394_v60 = vpop.f32.mrf.mxu1 }
 0x1b3   :  { %v1044_v61 = vadd.f32 %v668_v59, %v394_v60 }
 0x1b4   :  { %v833_v62 = vpop.f32.mrf.mxu1 }
 0x1b5   :  { %v410_v63 = vmul.f32 0.5, %v1044_v61 }
 0x1b7   :  { %v411_v1 = vmul.f32 1.442695, %v410_v63 }
 0x1b9   :  { %887 = vpow2.f32 %v411_v1 }
 0x1be   :  { %v886_v3 = vpop.eup %885 }
 0x1bf   :  { %403 = vrot.lane.b32.xlu0 %v886_v3, %s951_s0 }
 0x1c6   :  { %v888_v4 = vpop.eup %887 }
 0x1c7   :  { %414 = vrot.lane.b32.xlu0 %v888_v4, %s951_s0 }
 0x231   :  { %v404_v11 = vpop.permute.xlu0 %403 }
 0x232   :  { %v406_v13 = vmul.f32 %v404_v11, %v398_v9 }
 0x234   :  { %v407_v14 = vadd.f32 %v406_v13, %v1041_v55 }
 0x236   :  { %632 = vrot.lane.b32.xlu0 %v407_v14, %s952_s5  ;;  %838 = vmatprep.mubr.msk.f32.mxu0 %vm426_vm2, %v407_v14 }
 0x239   :  { %v415_v19 = vpop.permute.xlu0 %414 }
 0x23a   :  { %v417_v20 = vmul.f32 %v669_v17, %v415_v19 }
 0x23c   :  { %v418_v22 = vadd.f32 %v417_v20, %v1044_v61 }
 0x23e   :  { %839 = vmatmul.mubr.msk.f32.vlgmr.msra.gmra.mxu0 %vm426_vm2, %v418_v22 }
 0x2a8   :  { %v633_v63 = vpop.permute.xlu0 %632 }
 0x2a9   :  { %v646_v0 = vsel %vm62_vm1, %v1041_v55, %v633_v63 }
 0x2fe   :  { %v840_v30 = vpop.f32.mrf.mxu0 }
 0x2ff   :  { %v505_v31 = vadd.f32 %v840_v30, %v670_v29 }
 0x300   :  { %v499_v32 = vpop.f32.mrf.mxu0 }
 0x301   :  { %v500_v33 = vadd.f32 %v670_v29, %v499_v32  ;;  %v509_v35 = vmax.f32 %v505_v31, 0.0 }
 0x303   :  { %v508_v34 = vmax.f32 %v500_v33, 0.0 }
 0x305   :  { %873 = vmatprep.mubr.f32.mxu1 %v508_v34 }
 0x306   :  { %874 = vmatmul.mubr.f32.vlgmr.msra.gmra.mxu1 %v509_v35 }
 0x3c6   :  { %v875_v37 = vpop.f32.mrf.mxu1 }
 0x3c7   :  { %v603_v38 = vadd.f32 %v875_v37, %v673_v36 }
 0x3c8   :  { %v597_v39 = vpop.f32.mrf.mxu1 }
 0x3c9   :  { %v675_v40 = vmul.f32 -1.442695, %v603_v38  ;;  %v598_v41 = vadd.f32 %v673_v36, %v597_v39 }
 0x3cb   :  { %889 = vpow2.f32 %v675_v40  ;;  %v674_v42 = vmul.f32 -1.442695, %v598_v41 }
 0x3cd   :  { %891 = vpow2.f32 %v674_v42 }
 0x3d8   :  { %v890_v43 = vpop.eup %889 }
 0x3d9   :  { %v613_v44 = vadd.f32 1.0, %v890_v43 }
 0x3da   :  { %v892_v45 = vpop.eup %891 }
 0x3db   :  { %v612_v46 = vadd.f32 1.0, %v892_v45  ;;  %893 = vrcp.f32 %v613_v44 }
 0x3dd   :  { %895 = vrcp.f32 %v612_v46 }
 0x3e8   :  { %v894_v47 = vpop.eup %893 }
 0x3e9   :  { %v619_v51 = vmul.f32 %v894_v47, %v894_v47 }
 0x3ea   :  { %v896_v48 = vpop.eup %895 }
 0x3eb   :  { %v618_v49 = vmul.f32 %v896_v48, %v896_v48  ;;  %v623_v52 = vsel %vm62_vm1, %v619_v51, 0.0 }
 0x3ed   :  { %v620_v50 = vsel %vm62_vm1, %v618_v49, 0.0 }
 0x3ee   :  { %621 = vadd.xlane.f32.xlu1 %v620_v50 }
 0x3f2   :  { %624 = vadd.xlane.f32.xlu1 %v623_v52 }
 0x403   :  { %634 = vrot.lane.b32.xlu1 %v418_v22, %s952_s5 }
 0x477   :  { %v622_v53 = vpop.xlane.xlu1 %621 }
 0x478   :  { %v626_v54 = vmax.f32 %v622_v53, 1e-24 }
 0x47a   :  { %897 = vrsqrt.f32 %v626_v54 }
 0x47b   :  { %v625_v56 = vpop.xlane.xlu1 %624 }
 0x47c   :  { %v627_v57 = vmax.f32 %v625_v56, 1e-24 }
 0x47e   :  { %899 = vrsqrt.f32 %v627_v57 }
 0x47f   :  { %v635_v2 = vpop.permute.xlu1 %634 }
 0x480   :  { %v647_v5 = vsel %vm62_vm1, %v1044_v61, %v635_v2 }
 0x487   :  { %v898_v58 = vpop.eup %897 }
 0x488   :  { %v630_v59 = vmul.f32 %v898_v58, %v896_v48 }
 0x48a   :  { %640 = vrot.lane.b32.xlu0 %v630_v59, %s953_s1 }
 0x48b   :  { %v900_v60 = vpop.eup %899 }
 0x48c   :  { %v631_v62 = vmul.f32 %v900_v60, %v894_v47 }
 0x48e   :  { %642 = vrot.lane.b32.xlu0 %v631_v62, %s953_s1 }
 0x4fc   :  { %v641_v1 = vpop.permute.xlu0 %640 }
 0x4fd   :  { %v649_v3 = vsel %vm648_vm3, %v646_v0, %v641_v1 }
 0x4fe   :  { %v652_v4 = vsel %vm651_vm4, %v649_v3, 0.0 }
 0x4ff   :  { %654 = vst [vmem:[%s1075_s4] sm:$0xff] %v652_v4 }
 0x500   :  { %v643_v6 = vpop.permute.xlu0 %642 }
 0x501   :  { %v650_v7 = vsel %vm648_vm3, %v647_v5, %v643_v6 }
 0x502   :  { %v653_v8 = vsel %vm651_vm4, %v650_v7, 0.0 }
 0x503   :  { %655 = vst [vmem:[%s1075_s4 + $0x8] sm:$0xff] %v653_v8 }
 0x504   :  { %660 = vsyncpa [#allocation3], 1 }
 0x505   :  { %661 = vsyncpa [#allocation5], 1 }

</bundles_post_ra>
